<compile_context>
chip_gen: v5e
topology: v5e:2x2
jax: 0.10.0
libtpu: 0.0.40
codegen_flags: <defaults>
</compile_context>

<pallas_src>
import jax
import jax.numpy as jnp
from jax import lax
from jax.experimental import pallas as pl
from jax.experimental.pallas import tpu as pltpu


def _predictor_kernel(x_ref, wx_ref, bx_ref, whh_ref, wout_ref, bout_ref,
                      out_ref, h_scr, c_scr, gx_scr):
    # x_ref   : (Tc*Bp, D)   bf16  time-major chunk, rows [t*Bp:(t+1)*Bp] = step t
    # wx_ref  : (D, 4H)      bf16  folded embedding+input projection  [i,f,o,g]
    # bx_ref  : (1, 4H)      f32   folded bias (bemb@Wih + b_ih + b_hh)
    # whh_ref : (H, 4H)      bf16  recurrent projection               [i,f,o,g]
    # wout_ref: (H, NOP)     bf16  head weights (lane-padded)
    # bout_ref: (1, NOP)     f32
    # out_ref : (Bp, NOP)    f32
    # h_scr/c_scr: (Bp, H)   f32   persistent LSTM state across grid steps
    # gx_scr  : (Tc*Bp, 4H)  f32   precomputed input-side gates for this chunk
    TB, _ = x_ref.shape
    Bp, H = h_scr.shape
    Tc = TB // Bp
    t_blk = pl.program_id(0)

    @pl.when(t_blk == 0)
    def _init():
        h_scr[...] = jnp.zeros_like(h_scr)
        c_scr[...] = jnp.zeros_like(c_scr)

    # One MXU matmul covers the input projection of every timestep in the
    # chunk; the bias broadcast happens once here, not inside the recurrence.
    gx_scr[...] = (jnp.dot(x_ref[...], wx_ref[...],
                           preferred_element_type=jnp.float32)
                   + bx_ref[...])

    def step(t, carry):
        h, c = carry
        row = pl.multiple_of(t * Bp, Bp)
        gates = gx_scr[pl.ds(row, Bp), :] + jnp.dot(
            h.astype(whh_ref.dtype), whh_ref[...],
            preferred_element_type=jnp.float32)
        # gate columns were permuted to [i, f, o, g] in the wrapper:
        # a single sigmoid over (Bp, 3H) and a single tanh over (Bp, H).
        s = jax.nn.sigmoid(gates[:, :3 * H])
        g = jnp.tanh(gates[:, 3 * H:])
        i = s[:, 0 * H:1 * H]
        f = s[:, 1 * H:2 * H]
        o = s[:, 2 * H:3 * H]
        c_new = f * c + i * g
        h_new = o * jnp.tanh(c_new)
        return h_new, c_new

    # Short fixed trip-count -> fully unrolled for LLO scheduling visibility.
    h, c = lax.fori_loop(0, Tc, step, (h_scr[...], c_scr[...]), unroll=True)
    h_scr[...] = h
    c_scr[...] = c

    @pl.when(t_blk == pl.num_programs(0) - 1)
    def _finalize():
        logits = jnp.dot(h.astype(wout_ref.dtype), wout_ref[...],
                         preferred_element_type=jnp.float32) + bout_ref[...]
        out_ref[...] = jax.nn.sigmoid(logits) * 2.0


def predictor_forward(x, params, num_obj=1):
    """x: (B, T, input_size) float32, matching the PyTorch batch_first input."""
    B, T, D = x.shape
    H = params["wemb"].shape[1]

    # ---- fold the embedding Linear into the LSTM input projection (exact) ----
    wx = params["wemb"] @ params["wih"]                    # (D, 4H)
    bx = params["bemb"] @ params["wih"] + params["b"]      # (1, 4H)
    whh = params["whh"]                                    # (H, 4H)

    # ---- permute gate columns from PyTorch [i,f,g,o] to [i,f,o,g] ----
    perm = jnp.concatenate([jnp.arange(0, 2 * H),          # i, f
                            jnp.arange(3 * H, 4 * H),      # o
                            jnp.arange(2 * H, 3 * H)])     # g
    wx, bx, whh = wx[:, perm], bx[:, perm], whh[:, perm]

    # ---- pad batch to a sublane multiple and head width to a full lane ----
    Bp = max(8, -(-B // 8) * 8)
    NOP = max(128, -(-num_obj // 128) * 128)
    x_tm = jnp.transpose(x, (1, 0, 2))                     # (T, B, D) time-major
    x_tm = jnp.pad(x_tm, ((0, 0), (0, Bp - B), (0, 0)))
    x_flat = x_tm.reshape(T * Bp, D).astype(jnp.bfloat16)

    wout = jnp.pad(params["wout"], ((0, 0), (0, NOP - num_obj)))
    bout = jnp.pad(params["bout"], ((0, 0), (0, NOP - num_obj)))

    # ---- stream x through VMEM in T-chunks (VMEM headroom, esp. v7x) ----
    Tc = min(T, 32)
    while T % Tc:
        Tc -= 1
    n_chunks = T // Tc

    # explicit VMEM budget (double-buffered x chunk + resident weights/scratch)
    vmem_bytes = int(
        2 * (Tc * Bp * D * 2)                  # x chunk (bf16), double-buffered
        + Tc * Bp * 4 * H * 4                  # gates_x scratch (f32)
        + (D + H) * 4 * H * 2                  # Wx + Whh (bf16)
        + H * NOP * 2 + (4 * H + NOP) * 4      # Wout (bf16) + biases (f32)
        + 2 * Bp * H * 4                       # h, c scratch
        + 2 * Bp * NOP * 4)                    # output
    vmem_limit = min(max(2 * vmem_bytes, 4 << 20), 32 << 20)

    # TODO(synk): for large B, add a leading 'parallel' batch grid axis so the
    # independent per-row recurrences shard across the two v7x TensorCores.
    # TODO(synk): the PyTorch `hidden=None` arg (non-zero initial state) is not
    # plumbed through; zero initial state (the default) is implemented.
    out = pl.pallas_call(
        _predictor_kernel,
        out_shape=jax.ShapeDtypeStruct((Bp, NOP), jnp.float32),
        grid_spec=pltpu.PrefetchScalarGridSpec(
            num_scalar_prefetch=0,
            grid=(n_chunks,),
            in_specs=[
                pl.BlockSpec((Tc * Bp, D), lambda t: (t, 0)),   # x chunk
                pl.BlockSpec((D, 4 * H), lambda t: (0, 0)),     # Wx (resident)
                pl.BlockSpec((1, 4 * H), lambda t: (0, 0)),     # bx
                pl.BlockSpec((H, 4 * H), lambda t: (0, 0)),     # Whh
                pl.BlockSpec((H, NOP), lambda t: (0, 0)),       # Wout
                pl.BlockSpec((1, NOP), lambda t: (0, 0)),       # bout
            ],
            out_specs=pl.BlockSpec((Bp, NOP), lambda t: (0, 0)),
            scratch_shapes=[
                pltpu.VMEM((Bp, H), jnp.float32),               # h state
                pltpu.VMEM((Bp, H), jnp.float32),               # c state
                pltpu.VMEM((Tc * Bp, 4 * H), jnp.float32),      # gates_x chunk
            ],
        ),
        compiler_params=pltpu.CompilerParams(
            dimension_semantics=("arbitrary",),
            vmem_limit_bytes=vmem_limit,
        ),
    )(x_flat, wx.astype(jnp.bfloat16), bx.astype(jnp.float32),
      whh.astype(jnp.bfloat16), wout.astype(jnp.bfloat16),
      bout.astype(jnp.float32))

    out = out[:B, :num_obj]
    if num_obj > 1:
        return out.reshape(-1, num_obj)
    return out.squeeze()          # matches torch: (1, B, 1) -> squeeze() -> (B,)


def init_params(key, input_size, hidden_size, num_obj=1):
    ks = jax.random.split(key, 8)
    s = 0.1
    return {
        "wemb": s * jax.random.normal(ks[0], (input_size, hidden_size), jnp.float32),
        "bemb": s * jax.random.normal(ks[1], (1, hidden_size), jnp.float32),
        "wih":  s * jax.random.normal(ks[2], (hidden_size, 4 * hidden_size), jnp.float32),
        "whh":  s * jax.random.normal(ks[3], (hidden_size, 4 * hidden_size), jnp.float32),
        # b = b_ih + b_hh folded into one bias vector (PyTorch gate order i,f,g,o)
        "b":    s * jax.random.normal(ks[4], (1, 4 * hidden_size), jnp.float32),
        "wout": s * jax.random.normal(ks[5], (hidden_size, num_obj), jnp.float32),
        "bout": s * jax.random.normal(ks[6], (1, num_obj), jnp.float32),
    }


def _reference_forward(x, params, num_obj=1):
    """Pure-JAX f32 reference mirroring the PyTorch module semantics."""
    B, T, _ = x.shape
    H = params["wemb"].shape[1]
    e = x @ params["wemb"] + params["bemb"]          # (B, T, H)
    h = jnp.zeros((B, H), jnp.float32)
    c = jnp.zeros((B, H), jnp.float32)
    for t in range(T):
        gates = e[:, t, :] @ params["wih"] + h @ params["whh"] + params["b"]
        i = jax.nn.sigmoid(gates[:, 0 * H:1 * H])
        f = jax.nn.sigmoid(gates[:, 1 * H:2 * H])
        g = jnp.tanh(gates[:, 2 * H:3 * H])
        o = jax.nn.sigmoid(gates[:, 3 * H:4 * H])
        c = f * c + i * g
        h = o * jnp.tanh(c)
    out = jax.nn.sigmoid(h @ params["wout"] + params["bout"]) * 2.0
    if num_obj > 1:
        return out.reshape(-1, num_obj)
    return out.squeeze()


if __name__ == "__main__":
    B, T, INPUT_SIZE, HIDDEN_SIZE, NUM_OBJ = 2, 8, 16, 32, 1

    key = jax.random.PRNGKey(0)
    kx, kp = jax.random.split(key)
    x = jax.random.normal(kx, (B, T, INPUT_SIZE), jnp.float32)
    params = init_params(kp, INPUT_SIZE, HIDDEN_SIZE, NUM_OBJ)

    out = predictor_forward(x, params, num_obj=NUM_OBJ)
    out = jax.block_until_ready(out)

    ref = _reference_forward(x, params, num_obj=NUM_OBJ)
    assert out.shape == ref.shape == (B,)
    # bf16 MXU operands inside the kernel -> looser tolerance vs. the f32 reference
    assert jnp.allclose(out, ref, atol=2e-2, rtol=2e-2), (out, ref)

    print("KERNEL_OK")
</pallas_src>

<mosaic_0001>
module attributes {stable_mosaic.version = 11 : i64} {
  func.func @_predictor_kernel(%arg0: i32, %arg1: memref<64x16xbf16, #tpu.memory_space<vmem>>, %arg2: memref<16x128xbf16, #tpu.memory_space<vmem>>, %arg3: memref<1x128xf32, #tpu.memory_space<vmem>>, %arg4: memref<32x128xbf16, #tpu.memory_space<vmem>>, %arg5: memref<32x128xbf16, #tpu.memory_space<vmem>>, %arg6: memref<1x128xf32, #tpu.memory_space<vmem>>, %arg7: memref<8x128xf32, #tpu.memory_space<vmem>>, %arg8: memref<8x32xf32, #tpu.memory_space<vmem>>, %arg9: memref<8x32xf32, #tpu.memory_space<vmem>>, %arg10: memref<64x128xf32, #tpu.memory_space<vmem>>) attributes {dimension_semantics = [#tpu.dimension_semantics<arbitrary>], iteration_bounds = array<i64: 1>, scalar_prefetch = 0 : i64, scratch_operands = 3 : i64, tpu.core_type = #tpu.core_type<tc>, window_params = [{transform_indices = @transform_0, window_bounds = array<i64: 64, 16>}, {pipeline_mode = #tpu.pipeline_mode<synchronous>, transform_indices = @transform_1, window_bounds = array<i64: 16, 128>}, {pipeline_mode = #tpu.pipeline_mode<synchronous>, transform_indices = @transform_2, window_bounds = array<i64: 1, 128>}, {pipeline_mode = #tpu.pipeline_mode<synchronous>, transform_indices = @transform_3, window_bounds = array<i64: 32, 128>}, {pipeline_mode = #tpu.pipeline_mode<synchronous>, transform_indices = @transform_4, window_bounds = array<i64: 32, 128>}, {pipeline_mode = #tpu.pipeline_mode<synchronous>, transform_indices = @transform_5, window_bounds = array<i64: 1, 128>}, {pipeline_mode = #tpu.pipeline_mode<synchronous>, transform_indices = @transform_6, window_bounds = array<i64: 8, 128>}]} {
    %c0_i32 = arith.constant 0 : i32
    %0 = arith.cmpi eq, %arg0, %c0_i32 : i32
    %1 = arith.extui %0 : i1 to i32
    %c0_i32_0 = arith.constant 0 : i32
    %2 = arith.cmpi ne, %1, %c0_i32_0 : i32
    scf.if %2 {
      %cst_67 = arith.constant 0.000000e+00 : f32
      %209 = vector.broadcast %cst_67 : f32 to vector<8x32xf32>
      %c0_68 = arith.constant 0 : index
      %c0_69 = arith.constant 0 : index
      %210 = vector.load %arg8[%c0_68, %c0_69] : memref<8x32xf32, #tpu.memory_space<vmem>>, vector<8x32xf32>
      tpu.vector_store %arg8[%c0_68, %c0_69], %209 {strides = array<i32>} : memref<8x32xf32, #tpu.memory_space<vmem>>, vector<8x32xf32>,
      %cst_70 = arith.constant 0.000000e+00 : f32
      %211 = vector.broadcast %cst_70 : f32 to vector<8x32xf32>
      %c0_71 = arith.constant 0 : index
      %c0_72 = arith.constant 0 : index
      %212 = vector.load %arg9[%c0_71, %c0_72] : memref<8x32xf32, #tpu.memory_space<vmem>>, vector<8x32xf32>
      tpu.vector_store %arg9[%c0_71, %c0_72], %211 {strides = array<i32>} : memref<8x32xf32, #tpu.memory_space<vmem>>, vector<8x32xf32>,
    } else {
    }
    %c0 = arith.constant 0 : index
    %c0_1 = arith.constant 0 : index
    %3 = vector.load %arg1[%c0, %c0_1] : memref<64x16xbf16, #tpu.memory_space<vmem>>, vector<64x16xbf16>
    %c0_2 = arith.constant 0 : index
    %c0_3 = arith.constant 0 : index
    %4 = vector.load %arg2[%c0_2, %c0_3] : memref<16x128xbf16, #tpu.memory_space<vmem>>, vector<16x128xbf16>
    %cst = arith.constant dense<0.000000e+00> : vector<64x128xf32>
    %5 = tpu.matmul %3, %4, %cst {dimension_numbers = #tpu.dot_dimension_numbers<[1], [0], [0], [1], [0, 0, 1, 1], [], []>} : vector<64x16xbf16>, vector<16x128xbf16>, vector<64x128xf32> -> vector<64x128xf32>
    %c0_4 = arith.constant 0 : index
    %c0_5 = arith.constant 0 : index
    %6 = vector.load %arg3[%c0_4, %c0_5] : memref<1x128xf32, #tpu.memory_space<vmem>>, vector<1x128xf32>
    %7 = vector.broadcast %6 : vector<1x128xf32> to vector<64x128xf32>
    %8 = arith.addf %5, %7 : vector<64x128xf32>
    %c0_6 = arith.constant 0 : index
    %c0_7 = arith.constant 0 : index
    %9 = vector.load %arg10[%c0_6, %c0_7] : memref<64x128xf32, #tpu.memory_space<vmem>>, vector<64x128xf32>
    tpu.vector_store %arg10[%c0_6, %c0_7], %8 {strides = array<i32>} : memref<64x128xf32, #tpu.memory_space<vmem>>, vector<64x128xf32>,
    %c0_8 = arith.constant 0 : index
    %c0_9 = arith.constant 0 : index
    %10 = vector.load %arg8[%c0_8, %c0_9] : memref<8x32xf32, #tpu.memory_space<vmem>>, vector<8x32xf32>
    %c0_10 = arith.constant 0 : index
    %c0_11 = arith.constant 0 : index
    %11 = vector.load %arg9[%c0_10, %c0_11] : memref<8x32xf32, #tpu.memory_space<vmem>>, vector<8x32xf32>
    %c0_i32_12 = arith.constant 0 : i32
    %c8_i32 = arith.constant 8 : i32
    %12 = arith.muli %c0_i32_12, %c8_i32 : i32
    %13 = tpu.assume_multiple %12, 8 : i32
    %14 = arith.index_cast %13 : i32 to index
    %c0_13 = arith.constant 0 : index
    %15 = vector.load %arg10[%14, %c0_13] : memref<64x128xf32, #tpu.memory_space<vmem>>, vector<8x128xf32>
    %16 = arith.truncf %10 : vector<8x32xf32> to vector<8x32xbf16>
    %c0_14 = arith.constant 0 : index
    %c0_15 = arith.constant 0 : index
    %17 = vector.load %arg4[%c0_14, %c0_15] : memref<32x128xbf16, #tpu.memory_space<vmem>>, vector<32x128xbf16>
    %cst_16 = arith.constant dense<0.000000e+00> : vector<8x128xf32>
    %18 = tpu.matmul %16, %17, %cst_16 {dimension_numbers = #tpu.dot_dimension_numbers<[1], [0], [0], [1], [0, 0, 1, 1], [], []>} : vector<8x32xbf16>, vector<32x128xbf16>, vector<8x128xf32> -> vector<8x128xf32>
    %19 = arith.addf %15, %18 : vector<8x128xf32>
    %20 = vector.extract_strided_slice %19 {offsets = [0, 0], sizes = [8, 96], strides = [1, 1]} : vector<8x128xf32> to vector<8x96xf32>
    %21 = arith.negf %20 : vector<8x96xf32>
    %22 = math.exp %21 : vector<8x96xf32>
    %cst_17 = arith.constant 1.000000e+00 : f32
    %23 = vector.broadcast %cst_17 : f32 to vector<8x96xf32>
    %24 = arith.addf %23, %22 : vector<8x96xf32>
    %25 = arith.divf %23, %24 : vector<8x96xf32>
    %26 = vector.extract_strided_slice %19 {offsets = [0, 96], sizes = [8, 32], strides = [1, 1]} : vector<8x128xf32> to vector<8x32xf32>
    %27 = math.tanh %26 : vector<8x32xf32>
    %28 = vector.extract_strided_slice %25 {offsets = [0, 0], sizes = [8, 32], strides = [1, 1]} : vector<8x96xf32> to vector<8x32xf32>
    %29 = vector.extract_strided_slice %25 {offsets = [0, 32], sizes = [8, 32], strides = [1, 1]} : vector<8x96xf32> to vector<8x32xf32>
    %30 = vector.extract_strided_slice %25 {offsets = [0, 64], sizes = [8, 32], strides = [1, 1]} : vector<8x96xf32> to vector<8x32xf32>
    %31 = arith.mulf %29, %11 : vector<8x32xf32>
    %32 = arith.mulf %28, %27 : vector<8x32xf32>
    %33 = arith.addf %31, %32 : vector<8x32xf32>
    %34 = math.tanh %33 : vector<8x32xf32>
    %35 = arith.mulf %30, %34 : vector<8x32xf32>
    %c1_i32 = arith.constant 1 : i32
    %c8_i32_18 = arith.constant 8 : i32
    %36 = arith.muli %c1_i32, %c8_i32_18 : i32
    %37 = tpu.assume_multiple %36, 8 : i32
    %38 = arith.index_cast %37 : i32 to index
    %c0_19 = arith.constant 0 : index
    %39 = vector.load %arg10[%38, %c0_19] : memref<64x128xf32, #tpu.memory_space<vmem>>, vector<8x128xf32>
    %40 = arith.truncf %35 : vector<8x32xf32> to vector<8x32xbf16>
    %c0_20 = arith.constant 0 : index
    %c0_21 = arith.constant 0 : index
    %41 = vector.load %arg4[%c0_20, %c0_21] : memref<32x128xbf16, #tpu.memory_space<vmem>>, vector<32x128xbf16>
    %cst_22 = arith.constant dense<0.000000e+00> : vector<8x128xf32>
    %42 = tpu.matmul %40, %41, %cst_22 {dimension_numbers = #tpu.dot_dimension_numbers<[1], [0], [0], [1], [0, 0, 1, 1], [], []>} : vector<8x32xbf16>, vector<32x128xbf16>, vector<8x128xf32> -> vector<8x128xf32>
    %43 = arith.addf %39, %42 : vector<8x128xf32>
    %44 = vector.extract_strided_slice %43 {offsets = [0, 0], sizes = [8, 96], strides = [1, 1]} : vector<8x128xf32> to vector<8x96xf32>
    %45 = arith.negf %44 : vector<8x96xf32>
    %46 = math.exp %45 : vector<8x96xf32>
    %cst_23 = arith.constant 1.000000e+00 : f32
    %47 = vector.broadcast %cst_23 : f32 to vector<8x96xf32>
    %48 = arith.addf %47, %46 : vector<8x96xf32>
    %49 = arith.divf %47, %48 : vector<8x96xf32>
    %50 = vector.extract_strided_slice %43 {offsets = [0, 96], sizes = [8, 32], strides = [1, 1]} : vector<8x128xf32> to vector<8x32xf32>
    %51 = math.tanh %50 : vector<8x32xf32>
    %52 = vector.extract_strided_slice %49 {offsets = [0, 0], sizes = [8, 32], strides = [1, 1]} : vector<8x96xf32> to vector<8x32xf32>
    %53 = vector.extract_strided_slice %49 {offsets = [0, 32], sizes = [8, 32], strides = [1, 1]} : vector<8x96xf32> to vector<8x32xf32>
    %54 = vector.extract_strided_slice %49 {offsets = [0, 64], sizes = [8, 32], strides = [1, 1]} : vector<8x96xf32> to vector<8x32xf32>
    %55 = arith.mulf %53, %33 : vector<8x32xf32>
    %56 = arith.mulf %52, %51 : vector<8x32xf32>
    %57 = arith.addf %55, %56 : vector<8x32xf32>
    %58 = math.tanh %57 : vector<8x32xf32>
    %59 = arith.mulf %54, %58 : vector<8x32xf32>
    %c2_i32 = arith.constant 2 : i32
    %c8_i32_24 = arith.constant 8 : i32
    %60 = arith.muli %c2_i32, %c8_i32_24 : i32
    %61 = tpu.assume_multiple %60, 8 : i32
    %62 = arith.index_cast %61 : i32 to index
    %c0_25 = arith.constant 0 : index
    %63 = vector.load %arg10[%62, %c0_25] : memref<64x128xf32, #tpu.memory_space<vmem>>, vector<8x128xf32>
    %64 = arith.truncf %59 : vector<8x32xf32> to vector<8x32xbf16>
    %c0_26 = arith.constant 0 : index
    %c0_27 = arith.constant 0 : index
    %65 = vector.load %arg4[%c0_26, %c0_27] : memref<32x128xbf16, #tpu.memory_space<vmem>>, vector<32x128xbf16>
    %cst_28 = arith.constant dense<0.000000e+00> : vector<8x128xf32>
    %66 = tpu.matmul %64, %65, %cst_28 {dimension_numbers = #tpu.dot_dimension_numbers<[1], [0], [0], [1], [0, 0, 1, 1], [], []>} : vector<8x32xbf16>, vector<32x128xbf16>, vector<8x128xf32> -> vector<8x128xf32>
    %67 = arith.addf %63, %66 : vector<8x128xf32>
    %68 = vector.extract_strided_slice %67 {offsets = [0, 0], sizes = [8, 96], strides = [1, 1]} : vector<8x128xf32> to vector<8x96xf32>
    %69 = arith.negf %68 : vector<8x96xf32>
    %70 = math.exp %69 : vector<8x96xf32>
    %cst_29 = arith.constant 1.000000e+00 : f32
    %71 = vector.broadcast %cst_29 : f32 to vector<8x96xf32>
    %72 = arith.addf %71, %70 : vector<8x96xf32>
    %73 = arith.divf %71, %72 : vector<8x96xf32>
    %74 = vector.extract_strided_slice %67 {offsets = [0, 96], sizes = [8, 32], strides = [1, 1]} : vector<8x128xf32> to vector<8x32xf32>
    %75 = math.tanh %74 : vector<8x32xf32>
    %76 = vector.extract_strided_slice %73 {offsets = [0, 0], sizes = [8, 32], strides = [1, 1]} : vector<8x96xf32> to vector<8x32xf32>
    %77 = vector.extract_strided_slice %73 {offsets = [0, 32], sizes = [8, 32], strides = [1, 1]} : vector<8x96xf32> to vector<8x32xf32>
    %78 = vector.extract_strided_slice %73 {offsets = [0, 64], sizes = [8, 32], strides = [1, 1]} : vector<8x96xf32> to vector<8x32xf32>
    %79 = arith.mulf %77, %57 : vector<8x32xf32>
    %80 = arith.mulf %76, %75 : vector<8x32xf32>
    %81 = arith.addf %79, %80 : vector<8x32xf32>
    %82 = math.tanh %81 : vector<8x32xf32>
    %83 = arith.mulf %78, %82 : vector<8x32xf32>
    %c3_i32 = arith.constant 3 : i32
    %c8_i32_30 = arith.constant 8 : i32
    %84 = arith.muli %c3_i32, %c8_i32_30 : i32
    %85 = tpu.assume_multiple %84, 8 : i32
    %86 = arith.index_cast %85 : i32 to index
    %c0_31 = arith.constant 0 : index
    %87 = vector.load %arg10[%86, %c0_31] : memref<64x128xf32, #tpu.memory_space<vmem>>, vector<8x128xf32>
    %88 = arith.truncf %83 : vector<8x32xf32> to vector<8x32xbf16>
    %c0_32 = arith.constant 0 : index
    %c0_33 = arith.constant 0 : index
    %89 = vector.load %arg4[%c0_32, %c0_33] : memref<32x128xbf16, #tpu.memory_space<vmem>>, vector<32x128xbf16>
    %cst_34 = arith.constant dense<0.000000e+00> : vector<8x128xf32>
    %90 = tpu.matmul %88, %89, %cst_34 {dimension_numbers = #tpu.dot_dimension_numbers<[1], [0], [0], [1], [0, 0, 1, 1], [], []>} : vector<8x32xbf16>, vector<32x128xbf16>, vector<8x128xf32> -> vector<8x128xf32>
    %91 = arith.addf %87, %90 : vector<8x128xf32>
    %92 = vector.extract_strided_slice %91 {offsets = [0, 0], sizes = [8, 96], strides = [1, 1]} : vector<8x128xf32> to vector<8x96xf32>
    %93 = arith.negf %92 : vector<8x96xf32>
    %94 = math.exp %93 : vector<8x96xf32>
    %cst_35 = arith.constant 1.000000e+00 : f32
    %95 = vector.broadcast %cst_35 : f32 to vector<8x96xf32>
    %96 = arith.addf %95, %94 : vector<8x96xf32>
    %97 = arith.divf %95, %96 : vector<8x96xf32>
    %98 = vector.extract_strided_slice %91 {offsets = [0, 96], sizes = [8, 32], strides = [1, 1]} : vector<8x128xf32> to vector<8x32xf32>
    %99 = math.tanh %98 : vector<8x32xf32>
    %100 = vector.extract_strided_slice %97 {offsets = [0, 0], sizes = [8, 32], strides = [1, 1]} : vector<8x96xf32> to vector<8x32xf32>
    %101 = vector.extract_strided_slice %97 {offsets = [0, 32], sizes = [8, 32], strides = [1, 1]} : vector<8x96xf32> to vector<8x32xf32>
    %102 = vector.extract_strided_slice %97 {offsets = [0, 64], sizes = [8, 32], strides = [1, 1]} : vector<8x96xf32> to vector<8x32xf32>
    %103 = arith.mulf %101, %81 : vector<8x32xf32>
    %104 = arith.mulf %100, %99 : vector<8x32xf32>
    %105 = arith.addf %103, %104 : vector<8x32xf32>
    %106 = math.tanh %105 : vector<8x32xf32>
    %107 = arith.mulf %102, %106 : vector<8x32xf32>
    %c4_i32 = arith.constant 4 : i32
    %c8_i32_36 = arith.constant 8 : i32
    %108 = arith.muli %c4_i32, %c8_i32_36 : i32
    %109 = tpu.assume_multiple %108, 8 : i32
    %110 = arith.index_cast %109 : i32 to index
    %c0_37 = arith.constant 0 : index
    %111 = vector.load %arg10[%110, %c0_37] : memref<64x128xf32, #tpu.memory_space<vmem>>, vector<8x128xf32>
    %112 = arith.truncf %107 : vector<8x32xf32> to vector<8x32xbf16>
    %c0_38 = arith.constant 0 : index
    %c0_39 = arith.constant 0 : index
    %113 = vector.load %arg4[%c0_38, %c0_39] : memref<32x128xbf16, #tpu.memory_space<vmem>>, vector<32x128xbf16>
    %cst_40 = arith.constant dense<0.000000e+00> : vector<8x128xf32>
    %114 = tpu.matmul %112, %113, %cst_40 {dimension_numbers = #tpu.dot_dimension_numbers<[1], [0], [0], [1], [0, 0, 1, 1], [], []>} : vector<8x32xbf16>, vector<32x128xbf16>, vector<8x128xf32> -> vector<8x128xf32>
    %115 = arith.addf %111, %114 : vector<8x128xf32>
    %116 = vector.extract_strided_slice %115 {offsets = [0, 0], sizes = [8, 96], strides = [1, 1]} : vector<8x128xf32> to vector<8x96xf32>
    %117 = arith.negf %116 : vector<8x96xf32>
    %118 = math.exp %117 : vector<8x96xf32>
    %cst_41 = arith.constant 1.000000e+00 : f32
    %119 = vector.broadcast %cst_41 : f32 to vector<8x96xf32>
    %120 = arith.addf %119, %118 : vector<8x96xf32>
    %121 = arith.divf %119, %120 : vector<8x96xf32>
    %122 = vector.extract_strided_slice %115 {offsets = [0, 96], sizes = [8, 32], strides = [1, 1]} : vector<8x128xf32> to vector<8x32xf32>
    %123 = math.tanh %122 : vector<8x32xf32>
    %124 = vector.extract_strided_slice %121 {offsets = [0, 0], sizes = [8, 32], strides = [1, 1]} : vector<8x96xf32> to vector<8x32xf32>
    %125 = vector.extract_strided_slice %121 {offsets = [0, 32], sizes = [8, 32], strides = [1, 1]} : vector<8x96xf32> to vector<8x32xf32>
    %126 = vector.extract_strided_slice %121 {offsets = [0, 64], sizes = [8, 32], strides = [1, 1]} : vector<8x96xf32> to vector<8x32xf32>
    %127 = arith.mulf %125, %105 : vector<8x32xf32>
    %128 = arith.mulf %124, %123 : vector<8x32xf32>
    %129 = arith.addf %127, %128 : vector<8x32xf32>
    %130 = math.tanh %129 : vector<8x32xf32>
    %131 = arith.mulf %126, %130 : vector<8x32xf32>
    %c5_i32 = arith.constant 5 : i32
    %c8_i32_42 = arith.constant 8 : i32
    %132 = arith.muli %c5_i32, %c8_i32_42 : i32
    %133 = tpu.assume_multiple %132, 8 : i32
    %134 = arith.index_cast %133 : i32 to index
    %c0_43 = arith.constant 0 : index
    %135 = vector.load %arg10[%134, %c0_43] : memref<64x128xf32, #tpu.memory_space<vmem>>, vector<8x128xf32>
    %136 = arith.truncf %131 : vector<8x32xf32> to vector<8x32xbf16>
    %c0_44 = arith.constant 0 : index
    %c0_45 = arith.constant 0 : index
    %137 = vector.load %arg4[%c0_44, %c0_45] : memref<32x128xbf16, #tpu.memory_space<vmem>>, vector<32x128xbf16>
    %cst_46 = arith.constant dense<0.000000e+00> : vector<8x128xf32>
    %138 = tpu.matmul %136, %137, %cst_46 {dimension_numbers = #tpu.dot_dimension_numbers<[1], [0], [0], [1], [0, 0, 1, 1], [], []>} : vector<8x32xbf16>, vector<32x128xbf16>, vector<8x128xf32> -> vector<8x128xf32>
    %139 = arith.addf %135, %138 : vector<8x128xf32>
    %140 = vector.extract_strided_slice %139 {offsets = [0, 0], sizes = [8, 96], strides = [1, 1]} : vector<8x128xf32> to vector<8x96xf32>
    %141 = arith.negf %140 : vector<8x96xf32>
    %142 = math.exp %141 : vector<8x96xf32>
    %cst_47 = arith.constant 1.000000e+00 : f32
    %143 = vector.broadcast %cst_47 : f32 to vector<8x96xf32>
    %144 = arith.addf %143, %142 : vector<8x96xf32>
    %145 = arith.divf %143, %144 : vector<8x96xf32>
    %146 = vector.extract_strided_slice %139 {offsets = [0, 96], sizes = [8, 32], strides = [1, 1]} : vector<8x128xf32> to vector<8x32xf32>
    %147 = math.tanh %146 : vector<8x32xf32>
    %148 = vector.extract_strided_slice %145 {offsets = [0, 0], sizes = [8, 32], strides = [1, 1]} : vector<8x96xf32> to vector<8x32xf32>
    %149 = vector.extract_strided_slice %145 {offsets = [0, 32], sizes = [8, 32], strides = [1, 1]} : vector<8x96xf32> to vector<8x32xf32>
    %150 = vector.extract_strided_slice %145 {offsets = [0, 64], sizes = [8, 32], strides = [1, 1]} : vector<8x96xf32> to vector<8x32xf32>
    %151 = arith.mulf %149, %129 : vector<8x32xf32>
    %152 = arith.mulf %148, %147 : vector<8x32xf32>
    %153 = arith.addf %151, %152 : vector<8x32xf32>
    %154 = math.tanh %153 : vector<8x32xf32>
    %155 = arith.mulf %150, %154 : vector<8x32xf32>
    %c6_i32 = arith.constant 6 : i32
    %c8_i32_48 = arith.constant 8 : i32
    %156 = arith.muli %c6_i32, %c8_i32_48 : i32
    %157 = tpu.assume_multiple %156, 8 : i32
    %158 = arith.index_cast %157 : i32 to index
    %c0_49 = arith.constant 0 : index
    %159 = vector.load %arg10[%158, %c0_49] : memref<64x128xf32, #tpu.memory_space<vmem>>, vector<8x128xf32>
    %160 = arith.truncf %155 : vector<8x32xf32> to vector<8x32xbf16>
    %c0_50 = arith.constant 0 : index
    %c0_51 = arith.constant 0 : index
    %161 = vector.load %arg4[%c0_50, %c0_51] : memref<32x128xbf16, #tpu.memory_space<vmem>>, vector<32x128xbf16>
    %cst_52 = arith.constant dense<0.000000e+00> : vector<8x128xf32>
    %162 = tpu.matmul %160, %161, %cst_52 {dimension_numbers = #tpu.dot_dimension_numbers<[1], [0], [0], [1], [0, 0, 1, 1], [], []>} : vector<8x32xbf16>, vector<32x128xbf16>, vector<8x128xf32> -> vector<8x128xf32>
    %163 = arith.addf %159, %162 : vector<8x128xf32>
    %164 = vector.extract_strided_slice %163 {offsets = [0, 0], sizes = [8, 96], strides = [1, 1]} : vector<8x128xf32> to vector<8x96xf32>
    %165 = arith.negf %164 : vector<8x96xf32>
    %166 = math.exp %165 : vector<8x96xf32>
    %cst_53 = arith.constant 1.000000e+00 : f32
    %167 = vector.broadcast %cst_53 : f32 to vector<8x96xf32>
    %168 = arith.addf %167, %166 : vector<8x96xf32>
    %169 = arith.divf %167, %168 : vector<8x96xf32>
    %170 = vector.extract_strided_slice %163 {offsets = [0, 96], sizes = [8, 32], strides = [1, 1]} : vector<8x128xf32> to vector<8x32xf32>
    %171 = math.tanh %170 : vector<8x32xf32>
    %172 = vector.extract_strided_slice %169 {offsets = [0, 0], sizes = [8, 32], strides = [1, 1]} : vector<8x96xf32> to vector<8x32xf32>
    %173 = vector.extract_strided_slice %169 {offsets = [0, 32], sizes = [8, 32], strides = [1, 1]} : vector<8x96xf32> to vector<8x32xf32>
    %174 = vector.extract_strided_slice %169 {offsets = [0, 64], sizes = [8, 32], strides = [1, 1]} : vector<8x96xf32> to vector<8x32xf32>
    %175 = arith.mulf %173, %153 : vector<8x32xf32>
    %176 = arith.mulf %172, %171 : vector<8x32xf32>
    %177 = arith.addf %175, %176 : vector<8x32xf32>
    %178 = math.tanh %177 : vector<8x32xf32>
    %179 = arith.mulf %174, %178 : vector<8x32xf32>
    %c7_i32 = arith.constant 7 : i32
    %c8_i32_54 = arith.constant 8 : i32
    %180 = arith.muli %c7_i32, %c8_i32_54 : i32
    %181 = tpu.assume_multiple %180, 8 : i32
    %182 = arith.index_cast %181 : i32 to index
    %c0_55 = arith.constant 0 : index
    %183 = vector.load %arg10[%182, %c0_55] : memref<64x128xf32, #tpu.memory_space<vmem>>, vector<8x128xf32>
    %184 = arith.truncf %179 : vector<8x32xf32> to vector<8x32xbf16>
    %c0_56 = arith.constant 0 : index
    %c0_57 = arith.constant 0 : index
    %185 = vector.load %arg4[%c0_56, %c0_57] : memref<32x128xbf16, #tpu.memory_space<vmem>>, vector<32x128xbf16>
    %cst_58 = arith.constant dense<0.000000e+00> : vector<8x128xf32>
    %186 = tpu.matmul %184, %185, %cst_58 {dimension_numbers = #tpu.dot_dimension_numbers<[1], [0], [0], [1], [0, 0, 1, 1], [], []>} : vector<8x32xbf16>, vector<32x128xbf16>, vector<8x128xf32> -> vector<8x128xf32>
    %187 = arith.addf %183, %186 : vector<8x128xf32>
    %188 = vector.extract_strided_slice %187 {offsets = [0, 0], sizes = [8, 96], strides = [1, 1]} : vector<8x128xf32> to vector<8x96xf32>
    %189 = arith.negf %188 : vector<8x96xf32>
    %190 = math.exp %189 : vector<8x96xf32>
    %cst_59 = arith.constant 1.000000e+00 : f32
    %191 = vector.broadcast %cst_59 : f32 to vector<8x96xf32>
    %192 = arith.addf %191, %190 : vector<8x96xf32>
    %193 = arith.divf %191, %192 : vector<8x96xf32>
    %194 = vector.extract_strided_slice %187 {offsets = [0, 96], sizes = [8, 32], strides = [1, 1]} : vector<8x128xf32> to vector<8x32xf32>
    %195 = math.tanh %194 : vector<8x32xf32>
    %196 = vector.extract_strided_slice %193 {offsets = [0, 0], sizes = [8, 32], strides = [1, 1]} : vector<8x96xf32> to vector<8x32xf32>
    %197 = vector.extract_strided_slice %193 {offsets = [0, 32], sizes = [8, 32], strides = [1, 1]} : vector<8x96xf32> to vector<8x32xf32>
    %198 = vector.extract_strided_slice %193 {offsets = [0, 64], sizes = [8, 32], strides = [1, 1]} : vector<8x96xf32> to vector<8x32xf32>
    %199 = arith.mulf %197, %177 : vector<8x32xf32>
    %200 = arith.mulf %196, %195 : vector<8x32xf32>
    %201 = arith.addf %199, %200 : vector<8x32xf32>
    %202 = math.tanh %201 : vector<8x32xf32>
    %203 = arith.mulf %198, %202 : vector<8x32xf32>
    %c8_i32_60 = arith.constant 8 : i32
    %c0_61 = arith.constant 0 : index
    %c0_62 = arith.constant 0 : index
    %204 = vector.load %arg8[%c0_61, %c0_62] : memref<8x32xf32, #tpu.memory_space<vmem>>, vector<8x32xf32>
    tpu.vector_store %arg8[%c0_61, %c0_62], %203 {strides = array<i32>} : memref<8x32xf32, #tpu.memory_space<vmem>>, vector<8x32xf32>,
    %c0_63 = arith.constant 0 : index
    %c0_64 = arith.constant 0 : index
    %205 = vector.load %arg9[%c0_63, %c0_64] : memref<8x32xf32, #tpu.memory_space<vmem>>, vector<8x32xf32>
    tpu.vector_store %arg9[%c0_63, %c0_64], %201 {strides = array<i32>} : memref<8x32xf32, #tpu.memory_space<vmem>>, vector<8x32xf32>,
    %c0_i32_65 = arith.constant 0 : i32
    %206 = arith.cmpi eq, %arg0, %c0_i32_65 : i32
    %207 = arith.extui %206 : i1 to i32
    %c0_i32_66 = arith.constant 0 : i32
    %208 = arith.cmpi ne, %207, %c0_i32_66 : i32
    scf.if %208 {
      %209 = arith.truncf %203 : vector<8x32xf32> to vector<8x32xbf16>
      %c0_67 = arith.constant 0 : index
      %c0_68 = arith.constant 0 : index
      %210 = vector.load %arg5[%c0_67, %c0_68] : memref<32x128xbf16, #tpu.memory_space<vmem>>, vector<32x128xbf16>
      %cst_69 = arith.constant dense<0.000000e+00> : vector<8x128xf32>
      %211 = tpu.matmul %209, %210, %cst_69 {dimension_numbers = #tpu.dot_dimension_numbers<[1], [0], [0], [1], [0, 0, 1, 1], [], []>} : vector<8x32xbf16>, vector<32x128xbf16>, vector<8x128xf32> -> vector<8x128xf32>
      %c0_70 = arith.constant 0 : index
      %c0_71 = arith.constant 0 : index
      %212 = vector.load %arg6[%c0_70, %c0_71] : memref<1x128xf32, #tpu.memory_space<vmem>>, vector<1x128xf32>
      %213 = vector.broadcast %212 : vector<1x128xf32> to vector<8x128xf32>
      %214 = arith.addf %211, %213 : vector<8x128xf32>
      %215 = arith.negf %214 : vector<8x128xf32>
      %216 = math.exp %215 : vector<8x128xf32>
      %cst_72 = arith.constant 1.000000e+00 : f32
      %217 = vector.broadcast %cst_72 : f32 to vector<8x128xf32>
      %218 = arith.addf %217, %216 : vector<8x128xf32>
      %219 = arith.divf %217, %218 : vector<8x128xf32>
      %cst_73 = arith.constant 2.000000e+00 : f32
      %220 = vector.broadcast %cst_73 : f32 to vector<8x128xf32>
      %221 = arith.mulf %219, %220 : vector<8x128xf32>
      %c0_74 = arith.constant 0 : index
      %c0_75 = arith.constant 0 : index
      %222 = vector.load %arg7[%c0_74, %c0_75] : memref<8x128xf32, #tpu.memory_space<vmem>>, vector<8x128xf32>
      tpu.vector_store %arg7[%c0_74, %c0_75], %221 {strides = array<i32>} : memref<8x128xf32, #tpu.memory_space<vmem>>, vector<8x128xf32>,
    } else {
    }
    return
  }
  func.func @transform_0(%arg0: i32) -> (i32, i32) {
    %c0_i32 = arith.constant 0 : i32
    %c0_i32_0 = arith.constant 0 : i32
    return %arg0, %c0_i32 : i32, i32
  }
  func.func @transform_1(%arg0: i32) -> (i32, i32) {
    %c0_i32 = arith.constant 0 : i32
    %c0_i32_0 = arith.constant 0 : i32
    %c0_i32_1 = arith.constant 0 : i32
    return %c0_i32, %c0_i32_0 : i32, i32
  }
  func.func @transform_2(%arg0: i32) -> (i32, i32) {
    %c0_i32 = arith.constant 0 : i32
    %c0_i32_0 = arith.constant 0 : i32
    %c0_i32_1 = arith.constant 0 : i32
    return %c0_i32, %c0_i32_0 : i32, i32
  }
  func.func @transform_3(%arg0: i32) -> (i32, i32) {
    %c0_i32 = arith.constant 0 : i32
    %c0_i32_0 = arith.constant 0 : i32
    %c0_i32_1 = arith.constant 0 : i32
    return %c0_i32, %c0_i32_0 : i32, i32
  }
  func.func @transform_4(%arg0: i32) -> (i32, i32) {
    %c0_i32 = arith.constant 0 : i32
    %c0_i32_0 = arith.constant 0 : i32
    %c0_i32_1 = arith.constant 0 : i32
    return %c0_i32, %c0_i32_0 : i32, i32
  }
  func.func @transform_5(%arg0: i32) -> (i32, i32) {
    %c0_i32 = arith.constant 0 : i32
    %c0_i32_0 = arith.constant 0 : i32
    %c0_i32_1 = arith.constant 0 : i32
    return %c0_i32, %c0_i32_0 : i32, i32
  }
  func.func @transform_6(%arg0: i32) -> (i32, i32) {
    %c0_i32 = arith.constant 0 : i32
    %c0_i32_0 = arith.constant 0 : i32
    %c0_i32_1 = arith.constant 0 : i32
    return %c0_i32, %c0_i32_0 : i32, i32
  }
}

</mosaic_0001>

<bundles_post_ra>
// kernel: tpu_custom_call.1
= control target key start
LH: loop header
LB: loop body
LE: loop exit
PB: predicated region body
PF: predicated region fallthrough
CT: control target
= control target key end

     0   :  { %vm29_vm0 = vcmask 261120   ;;  %vm72_vm1 = vcmask 130048   ;;  %v879_v3 = vmov 0.0   ;;  %s1036_s0 = inlined_call_operand.vmem [shape: bf16[64,16], index: 0, kind: input, shape index: {}]   ;;  %s1037_s1 = inlined_call_operand.vmem [shape: bf16[16,128], index: 1, kind: input, shape index: {}]   ;;  %s1038_s2 = inlined_call_operand.vmem [shape: f32[1,128], index: 2, kind: input, shape index: {}]   ;;  %s1039_s3 = inlined_call_operand.vmem [shape: bf16[32,128], index: 3, kind: input, shape index: {}]   ;;  %s1040_s4 = inlined_call_operand.vmem [shape: bf16[32,128], index: 4, kind: input, shape index: {}]   ;;  %s1041_s5 = inlined_call_operand.vmem [shape: f32[1,128], index: 5, kind: input, shape index: {}]   ;;  %s1042_s6 = inlined_call_operand.hbm [shape: f32[8,128], index: 6, kind: output, shape index: {}]  }
   0x1   :  { %v773_v0 = vld [vmem:[%s1037_s1] sm:$0xff]  ;;  %v925_v1 = vld [vmem:[%s1039_s3 + $0x8] sm:$0xff]  ;;  %30 = vst.msk [vmem:[#allocation2] sm:$0xff] %vm29_vm0, %v879_v3 }
   0x2   :  { %v769_v2 = vld [vmem:[%s1036_s0] sm:$0xff]  ;;  %92 = vmatpush.bf16.msra.mxu0 %v773_v0  ;;  %152 = vmatpush.bf16.msra.mxu1 %v925_v1  ;;  %31 = vst.msk [vmem:[#allocation3] sm:$0xff] %vm29_vm0, %v879_v3 }
   0x3   :  { %v935_v4 = vld [vmem:[%s1039_s3] sm:$0xff] }
   0x4   :  { %11 = vsyncpa [#allocation6], 0  ;;  %216 = vmatpush.bf16.msra.mxu2 %v925_v1  ;;  %276 = vmatpush.bf16.msra.mxu3 %v925_v1  ;;  %v956_v7 = vld [vmem:[%s1038_s2] ss:$0 sm:$0xff]  ;;  %s880_s29 = smov 32   ;;  %s881_s2 = smov 64  }
   0x5   :  { %731 = vmatmul.msk.bf16.vlgmr.msra.gmra.mxu0 %vm72_vm1, %v769_v2  ;;  %v770_v0 = vld [vmem:[%s1036_s0 + $0x8] sm:$0xff]  ;;  %s702_s20 = sshll.u32 %s1042_s6, 4  ;;  %s703_s20 = int_to_ptr.hbm [resolvable:$true] %s702_s20 }
   0x6   :  { %153 = vmatpush.bf16.msra.mxu1 %v935_v4 }
   0x8   :  { %217 = vmatpush.bf16.msra.mxu2 %v935_v4  ;;  %277 = vmatpush.bf16.msra.mxu3 %v935_v4  ;;  %v122_v5 = vld [vmem:[#allocation2] sm:$0xff] }
   0x9   :  { %v125_v6 = vpack.c.bf16 %v122_v5, %v122_v5  ;;  %v123_v14 = vld [vmem:[#allocation3] sm:$0xff] }
   0xa   :  { %336 = vmatpush.bf16.msrb.mxu1 %v925_v1 }
   0xb   :  { %743 = vmatmul.msk.bf16.vlgmr.msra.gmra.mxu1 %vm29_vm0, %v125_v6 }
   0xc   :  { %396 = vmatpush.bf16.msrb.mxu2 %v925_v1  ;;  %456 = vmatpush.bf16.msrb.mxu3 %v925_v1 }
   0xe   :  { %337 = vmatpush.bf16.msrb.mxu1 %v935_v4 }
  0x10   :  { %397 = vmatpush.bf16.msrb.mxu2 %v935_v4  ;;  %457 = vmatpush.bf16.msrb.mxu3 %v935_v4 }
  0x12   :  { %516 = vmatpush.bf16.msra.mxu1 %v925_v1 }
  0x15   :  { %732 = vmatmul.msk.bf16.gmra.mxu0 %vm72_vm1, %v770_v0 }
  0x16   :  { %517 = vmatpush.bf16.msra.mxu1 %v935_v4 }
  0x82   :  { %v94_v8 = vpop.f32.mrf.mxu0 }
  0x83   :  { %v95_v9 = vadd.f32 %v956_v7, %v94_v8 }
  0x88   :  { %v155_v10 = vpop.f32.mrf.mxu1 }
  0x89   :  { %v159_v11 = vadd.f32 %v155_v10, %v95_v9 }
  0x8a   :  { %v96_v39 = vpop.f32.mrf.mxu0 }
  0x8b   :  { %785 = vtanh.f32 %v159_v11  ;;  %v744_v15 = vmul.f32 -1.442695, %v159_v11  ;;  %v97_v40 = vadd.f32 %v956_v7, %v96_v39 }
  0x8d   :  { %787 = vpow2.f32 %v744_v15 }
  0x90   :  { %v157_v12 = vpop.f32.mrf.mxu1 }
  0x91   :  { %v786_v13 = vpop.eup %785 }
  0x92   :  { %186 = vrot.lane.b32.xlu0 %v786_v13, %s880_s29  ;;  %v99_v5 = vpop.f32.mrf.mxu0 }
  0x93   :  { %v788_v16 = vpop.eup %787  ;;  %v100_v6 = vadd.f32 %v956_v7, %v99_v5 }
  0x94   :  { %v163_v17 = vadd.f32 1.0, %v788_v16 }
  0x96   :  { %789 = vrcp.f32 %v163_v17  ;;  %v175_v23 = vand.u32 2147483648, %v163_v17  ;;  %vm169_vm3 = vweird.f32 %v163_v17  ;;  %v173_v24 = vand.u32 2147483647, %v163_v17 }
  0x98   :  { %v176_v26 = vor.u32 1.1754944e-38, %v175_v23  ;;  %vm174_vm5 = vcmp.eq.f32.partialorder %v173_v24, 8.507059e+37 }
  0x9a   :  { %181 = vrot.lane.b32.xlu0 %v123_v14, %s880_s29 }
  0x9c   :  { %v790_v18 = vpop.eup %789 }
  0x9d   :  { %v165_v19 = vmul.f32 %v790_v18, %v163_v17  ;;  %vm170_vm2 = vweird.f32 %v790_v18 }
  0x9e   :  { %vm171_vm4 = vmor %vm169_vm3, %vm170_vm2 }
  0x9f   :  { %v166_v20 = vsub.f32 1.0, %v165_v19 }
  0xa1   :  { %v167_v21 = vmul.f32 %v790_v18, %v166_v20 }
  0xa3   :  { %v168_v22 = vadd.f32 %v790_v18, %v167_v21 }
  0xa5   :  { %v172_v25 = vsel %vm171_vm4, %v790_v18, %v168_v22 }
  0xa6   :  { %v177_v28 = vsel %vm174_vm5, %v176_v26, %v172_v25 }
 0x104   :  { %v187_v27 = vpop.permute.xlu0 %186 }
 0x105   :  { %v189_v29 = vmul.f32 %v187_v27, %v177_v28 }
 0x107   :  { %191 = vrot.lane.b32.xlu1 %v189_v29, %s880_s29 }
 0x10c   :  { %v182_v30 = vpop.permute.xlu0 %181 }
 0x10d   :  { %v184_v31 = vmul.f32 %v182_v30, %v177_v28 }
 0x179   :  { %v192_v32 = vpop.permute.xlu1 %191 }
 0x17a   :  { %v194_v33 = vadd.f32 %v192_v32, %v184_v31 }
 0x17c   :  { %791 = vtanh.f32 %v194_v33 }
 0x182   :  { %v792_v34 = vpop.eup %791 }
 0x183   :  { %197 = vrot.lane.b32.xlu1 %v792_v34, %s880_s29 }
 0x1f5   :  { %v198_v35 = vpop.permute.xlu1 %197 }
 0x1f6   :  { %v200_v36 = vmul.f32 %v198_v35, %v177_v28  ;;  %v101_v35 = vpop.f32.mrf.mxu0 }
 0x1f8   :  { %v203_v37 = vpack.c.bf16 %v200_v36, %v200_v36  ;;  %v102_v36 = vadd.f32 %v956_v7, %v101_v35 }
 0x1fa   :  { %205 = vrot.lane.b32.xlu2 %v203_v37, %s881_s2 }
 0x254   :  { %v206_v38 = vpop.permute.xlu2 %205 }
 0x255   :  { %745 = vmatmul.msk.bf16.vlgmr.msra.gmra.mxu2 %vm29_vm0, %v206_v38 }
 0x256   :  { %576 = vmatpush.bf16.msra.mxu2 %v925_v1 }
 0x25a   :  { %577 = vmatpush.bf16.msra.mxu2 %v935_v4 }
 0x2d8   :  { %v219_v41 = vpop.f32.mrf.mxu2 }
 0x2d9   :  { %v223_v42 = vadd.f32 %v219_v41, %v97_v40 }
 0x2db   :  { %793 = vtanh.f32 %v223_v42  ;;  %v746_v45 = vmul.f32 -1.442695, %v223_v42 }
 0x2dd   :  { %795 = vpow2.f32 %v746_v45 }
 0x2e0   :  { %v221_v43 = vpop.f32.mrf.mxu2 }
 0x2e1   :  { %v794_v44 = vpop.eup %793 }
 0x2e2   :  { %246 = vrot.lane.b32.xlu2 %v794_v44, %s880_s29 }
 0x2e3   :  { %v796_v46 = vpop.eup %795 }
 0x2e4   :  { %v227_v47 = vadd.f32 1.0, %v796_v46 }
 0x2e6   :  { %797 = vrcp.f32 %v227_v47  ;;  %v239_v53 = vand.u32 2147483648, %v227_v47  ;;  %vm233_vm7 = vweird.f32 %v227_v47  ;;  %v237_v54 = vand.u32 2147483647, %v227_v47 }
 0x2e8   :  { %v240_v56 = vor.u32 1.1754944e-38, %v239_v53  ;;  %vm238_vm9 = vcmp.eq.f32.partialorder %v237_v54, 8.507059e+37 }
 0x2ec   :  { %v798_v48 = vpop.eup %797 }
 0x2ed   :  { %v229_v49 = vmul.f32 %v798_v48, %v227_v47  ;;  %vm234_vm6 = vweird.f32 %v798_v48 }
 0x2ee   :  { %vm235_vm8 = vmor %vm233_vm7, %vm234_vm6 }
 0x2ef   :  { %v230_v50 = vsub.f32 1.0, %v229_v49 }
 0x2f1   :  { %v231_v51 = vmul.f32 %v798_v48, %v230_v50 }
 0x2f3   :  { %v232_v52 = vadd.f32 %v798_v48, %v231_v51 }
 0x2f5   :  { %v236_v55 = vsel %vm235_vm8, %v798_v48, %v232_v52 }
 0x2f6   :  { %v241_v58 = vsel %vm238_vm9, %v240_v56, %v236_v55 }
 0x2f7   :  { %v244_v60 = vmul.f32 %v241_v58, %v194_v33 }
 0x33c   :  { %v247_v57 = vpop.permute.xlu2 %246 }
 0x33d   :  { %v249_v59 = vmul.f32 %v247_v57, %v241_v58 }
 0x33f   :  { %251 = vrot.lane.b32.xlu0 %v249_v59, %s880_s29 }
 0x3b1   :  { %v252_v61 = vpop.permute.xlu0 %251 }
 0x3b2   :  { %v254_v62 = vadd.f32 %v252_v61, %v244_v60  ;;  %v771_v60 = vld [vmem:[%s1036_s0 + $0x10] sm:$0xff] }
 0x3b3   :  { %733 = vmatmul.msk.bf16.gmra.mxu0 %vm72_vm1, %v771_v60 }
 0x3b4   :  { %799 = vtanh.f32 %v254_v62 }
 0x3ba   :  { %v800_v63 = vpop.eup %799 }
 0x3bb   :  { %257 = vrot.lane.b32.xlu1 %v800_v63, %s880_s29 }
 0x42d   :  { %v258_v1 = vpop.permute.xlu1 %257 }
 0x42e   :  { %v260_v2 = vmul.f32 %v258_v1, %v241_v58 }
 0x430   :  { %v263_v3 = vpack.c.bf16 %v260_v2, %v260_v2  ;;  %v104_v1 = vpop.f32.mrf.mxu0 }
 0x431   :  { %v105_v2 = vadd.f32 %v956_v7, %v104_v1 }
 0x432   :  { %265 = vrot.lane.b32.xlu2 %v263_v3, %s881_s2 }
 0x48c   :  { %v266_v4 = vpop.permute.xlu2 %265 }
 0x48d   :  { %747 = vmatmul.msk.bf16.vlgmr.msra.gmra.mxu3 %vm29_vm0, %v266_v4 }
 0x510   :  { %v279_v8 = vpop.f32.mrf.mxu3 }
 0x511   :  { %v283_v9 = vadd.f32 %v279_v8, %v100_v6 }
 0x513   :  { %801 = vtanh.f32 %v283_v9  ;;  %v748_v12 = vmul.f32 -1.442695, %v283_v9 }
 0x515   :  { %803 = vpow2.f32 %v748_v12 }
 0x518   :  { %v281_v10 = vpop.f32.mrf.mxu3 }
 0x519   :  { %v802_v11 = vpop.eup %801 }
 0x51a   :  { %306 = vrot.lane.b32.xlu0 %v802_v11, %s880_s29 }
 0x51b   :  { %v804_v13 = vpop.eup %803 }
 0x51c   :  { %v287_v14 = vadd.f32 1.0, %v804_v13 }
 0x51e   :  { %805 = vrcp.f32 %v287_v14  ;;  %v299_v20 = vand.u32 2147483648, %v287_v14  ;;  %vm293_vm11 = vweird.f32 %v287_v14  ;;  %v297_v21 = vand.u32 2147483647, %v287_v14 }
 0x520   :  { %v300_v23 = vor.u32 1.1754944e-38, %v299_v20  ;;  %vm298_vm13 = vcmp.eq.f32.partialorder %v297_v21, 8.507059e+37 }
 0x524   :  { %v806_v15 = vpop.eup %805 }
 0x525   :  { %v289_v16 = vmul.f32 %v806_v15, %v287_v14  ;;  %vm294_vm10 = vweird.f32 %v806_v15 }
 0x526   :  { %vm295_vm12 = vmor %vm293_vm11, %vm294_vm10 }
 0x527   :  { %v290_v17 = vsub.f32 1.0, %v289_v16 }
 0x529   :  { %v291_v18 = vmul.f32 %v806_v15, %v290_v17 }
 0x52b   :  { %v292_v19 = vadd.f32 %v806_v15, %v291_v18 }
 0x52d   :  { %v296_v22 = vsel %vm295_vm12, %v806_v15, %v292_v19 }
 0x52e   :  { %v301_v25 = vsel %vm298_vm13, %v300_v23, %v296_v22 }
 0x52f   :  { %v304_v27 = vmul.f32 %v301_v25, %v254_v62 }
 0x58c   :  { %v307_v24 = vpop.permute.xlu0 %306 }
 0x58d   :  { %v309_v26 = vmul.f32 %v307_v24, %v301_v25 }
 0x58f   :  { %311 = vrot.lane.b32.xlu1 %v309_v26, %s880_s29 }
 0x601   :  { %v312_v28 = vpop.permute.xlu1 %311 }
 0x602   :  { %v314_v29 = vadd.f32 %v312_v28, %v304_v27 }
 0x604   :  { %807 = vtanh.f32 %v314_v29 }
 0x60a   :  { %v808_v30 = vpop.eup %807 }
 0x60b   :  { %317 = vrot.lane.b32.xlu2 %v808_v30, %s880_s29 }
 0x665   :  { %v318_v31 = vpop.permute.xlu2 %317 }
 0x666   :  { %v320_v32 = vmul.f32 %v318_v31, %v301_v25  ;;  %v106_v31 = vpop.f32.mrf.mxu0 }
 0x668   :  { %v323_v33 = vpack.c.bf16 %v320_v32, %v320_v32  ;;  %v107_v32 = vadd.f32 %v956_v7, %v106_v31 }
 0x66a   :  { %325 = vrot.lane.b32.xlu0 %v323_v33, %s881_s2 }
 0x6dc   :  { %v326_v34 = vpop.permute.xlu0 %325 }
 0x6dd   :  { %749 = vmatmul.msk.bf16.vlgmr.msrb.gmra.mxu1 %vm29_vm0, %v326_v34 }
 0x75a   :  { %v339_v37 = vpop.f32.mrf.mxu1 }
 0x75b   :  { %v343_v38 = vadd.f32 %v339_v37, %v102_v36 }
 0x75d   :  { %809 = vtanh.f32 %v343_v38  ;;  %v750_v41 = vmul.f32 -1.442695, %v343_v38 }
 0x75f   :  { %811 = vpow2.f32 %v750_v41 }
 0x762   :  { %v341_v39 = vpop.f32.mrf.mxu1 }
 0x763   :  { %v810_v40 = vpop.eup %809 }
 0x764   :  { %366 = vrot.lane.b32.xlu1 %v810_v40, %s880_s29 }
 0x765   :  { %v812_v42 = vpop.eup %811 }
 0x766   :  { %v347_v43 = vadd.f32 1.0, %v812_v42 }
 0x768   :  { %813 = vrcp.f32 %v347_v43  ;;  %v359_v49 = vand.u32 2147483648, %v347_v43  ;;  %vm353_vm15 = vweird.f32 %v347_v43  ;;  %v357_v50 = vand.u32 2147483647, %v347_v43 }
 0x76a   :  { %v360_v52 = vor.u32 1.1754944e-38, %v359_v49  ;;  %vm358_vm3 = vcmp.eq.f32.partialorder %v357_v50, 8.507059e+37 }
 0x76e   :  { %v814_v44 = vpop.eup %813 }
 0x76f   :  { %v349_v45 = vmul.f32 %v814_v44, %v347_v43  ;;  %vm354_vm14 = vweird.f32 %v814_v44 }
 0x770   :  { %vm355_vm2 = vmor %vm353_vm15, %vm354_vm14 }
 0x771   :  { %v350_v46 = vsub.f32 1.0, %v349_v45 }
 0x773   :  { %v351_v47 = vmul.f32 %v814_v44, %v350_v46 }
 0x775   :  { %v352_v48 = vadd.f32 %v814_v44, %v351_v47 }
 0x777   :  { %v356_v51 = vsel %vm355_vm2, %v814_v44, %v352_v48 }
 0x778   :  { %v361_v54 = vsel %vm358_vm3, %v360_v52, %v356_v51 }
 0x779   :  { %v364_v56 = vmul.f32 %v361_v54, %v314_v29 }
 0x7d6   :  { %v367_v53 = vpop.permute.xlu1 %366 }
 0x7d7   :  { %v369_v55 = vmul.f32 %v367_v53, %v361_v54 }
 0x7d9   :  { %371 = vrot.lane.b32.xlu2 %v369_v55, %s880_s29 }
 0x833   :  { %v372_v57 = vpop.permute.xlu2 %371 }
 0x834   :  { %v374_v58 = vadd.f32 %v372_v57, %v364_v56  ;;  %v772_v56 = vld [vmem:[%s1036_s0 + $0x18] sm:$0xff]  ;;  %s882_s0 = smov 96  }
 0x835   :  { %734 = vmatmul.msk.bf16.gmra.mxu0 %vm72_vm1, %v772_v56 }
 0x836   :  { %815 = vtanh.f32 %v374_v58 }
 0x83c   :  { %v816_v59 = vpop.eup %815 }
 0x83d   :  { %377 = vrot.lane.b32.xlu0 %v816_v59, %s880_s29 }
 0x8af   :  { %v378_v61 = vpop.permute.xlu0 %377 }
 0x8b0   :  { %v380_v62 = vmul.f32 %v378_v61, %v361_v54 }
 0x8b2   :  { %v383_v63 = vpack.c.bf16 %v380_v62, %v380_v62  ;;  %v109_v61 = vpop.f32.mrf.mxu0 }
 0x8b3   :  { %v110_v62 = vadd.f32 %v956_v7, %v109_v61 }
 0x8b4   :  { %385 = vrot.lane.b32.xlu1 %v383_v63, %s881_s2 }
 0x926   :  { %v386_v0 = vpop.permute.xlu1 %385 }
 0x927   :  { %751 = vmatmul.msk.bf16.vlgmr.msrb.gmra.mxu2 %vm29_vm0, %v386_v0 }
 0x9aa   :  { %v399_v3 = vpop.f32.mrf.mxu2 }
 0x9ab   :  { %v403_v4 = vadd.f32 %v399_v3, %v105_v2 }
 0x9ad   :  { %817 = vtanh.f32 %v403_v4  ;;  %v752_v8 = vmul.f32 -1.442695, %v403_v4 }
 0x9af   :  { %819 = vpow2.f32 %v752_v8 }
 0x9b2   :  { %v401_v5 = vpop.f32.mrf.mxu2 }
 0x9b3   :  { %v818_v6 = vpop.eup %817 }
 0x9b4   :  { %426 = vrot.lane.b32.xlu2 %v818_v6, %s880_s29 }
 0x9b5   :  { %v820_v9 = vpop.eup %819 }
 0x9b6   :  { %v407_v10 = vadd.f32 1.0, %v820_v9 }
 0x9b8   :  { %821 = vrcp.f32 %v407_v10  ;;  %v419_v16 = vand.u32 2147483648, %v407_v10  ;;  %vm413_vm5 = vweird.f32 %v407_v10  ;;  %v417_v17 = vand.u32 2147483647, %v407_v10 }
 0x9ba   :  { %v420_v19 = vor.u32 1.1754944e-38, %v419_v16  ;;  %vm418_vm7 = vcmp.eq.f32.partialorder %v417_v17, 8.507059e+37 }
 0x9be   :  { %v822_v11 = vpop.eup %821 }
 0x9bf   :  { %v409_v12 = vmul.f32 %v822_v11, %v407_v10  ;;  %vm414_vm4 = vweird.f32 %v822_v11 }
 0x9c0   :  { %vm415_vm6 = vmor %vm413_vm5, %vm414_vm4 }
 0x9c1   :  { %v410_v13 = vsub.f32 1.0, %v409_v12 }
 0x9c3   :  { %v411_v14 = vmul.f32 %v822_v11, %v410_v13 }
 0x9c5   :  { %v412_v15 = vadd.f32 %v822_v11, %v411_v14 }
 0x9c7   :  { %v416_v18 = vsel %vm415_vm6, %v822_v11, %v412_v15 }
 0x9c8   :  { %v421_v21 = vsel %vm418_vm7, %v420_v19, %v416_v18 }
 0x9c9   :  { %v424_v23 = vmul.f32 %v421_v21, %v374_v58 }
 0xa0e   :  { %v427_v20 = vpop.permute.xlu2 %426 }
 0xa0f   :  { %v429_v22 = vmul.f32 %v427_v20, %v421_v21 }
 0xa11   :  { %431 = vrot.lane.b32.xlu0 %v429_v22, %s880_s29 }
 0xa83   :  { %v432_v24 = vpop.permute.xlu0 %431 }
 0xa84   :  { %v434_v25 = vadd.f32 %v432_v24, %v424_v23 }
 0xa86   :  { %823 = vtanh.f32 %v434_v25 }
 0xa8c   :  { %v824_v26 = vpop.eup %823 }
 0xa8d   :  { %437 = vrot.lane.b32.xlu1 %v824_v26, %s880_s29 }
 0xaff   :  { %v438_v27 = vpop.permute.xlu1 %437 }
 0xb00   :  { %v440_v28 = vmul.f32 %v438_v27, %v421_v21  ;;  %v111_v27 = vpop.f32.mrf.mxu0 }
 0xb02   :  { %v443_v29 = vpack.c.bf16 %v440_v28, %v440_v28  ;;  %v112_v28 = vadd.f32 %v956_v7, %v111_v27 }
 0xb04   :  { %445 = vrot.lane.b32.xlu2 %v443_v29, %s881_s2 }
 0xb5e   :  { %v446_v30 = vpop.permute.xlu2 %445 }
 0xb5f   :  { %753 = vmatmul.msk.bf16.vlgmr.msrb.gmra.mxu3 %vm29_vm0, %v446_v30 }
 0xbe2   :  { %v459_v33 = vpop.f32.mrf.mxu3 }
 0xbe3   :  { %v463_v34 = vadd.f32 %v459_v33, %v107_v32 }
 0xbe5   :  { %825 = vtanh.f32 %v463_v34  ;;  %v754_v37 = vmul.f32 -1.442695, %v463_v34 }
 0xbe7   :  { %827 = vpow2.f32 %v754_v37 }
 0xbea   :  { %v461_v35 = vpop.f32.mrf.mxu3 }
 0xbeb   :  { %v826_v36 = vpop.eup %825 }
 0xbec   :  { %486 = vrot.lane.b32.xlu0 %v826_v36, %s880_s29 }
 0xbed   :  { %v828_v38 = vpop.eup %827 }
 0xbee   :  { %v467_v39 = vadd.f32 1.0, %v828_v38 }
 0xbf0   :  { %829 = vrcp.f32 %v467_v39  ;;  %v479_v45 = vand.u32 2147483648, %v467_v39  ;;  %vm473_vm9 = vweird.f32 %v467_v39  ;;  %v477_v46 = vand.u32 2147483647, %v467_v39 }
 0xbf2   :  { %v480_v48 = vor.u32 1.1754944e-38, %v479_v45  ;;  %vm478_vm11 = vcmp.eq.f32.partialorder %v477_v46, 8.507059e+37 }
 0xbf6   :  { %v830_v40 = vpop.eup %829 }
 0xbf7   :  { %v469_v41 = vmul.f32 %v830_v40, %v467_v39  ;;  %vm474_vm8 = vweird.f32 %v830_v40 }
 0xbf8   :  { %vm475_vm10 = vmor %vm473_vm9, %vm474_vm8 }
 0xbf9   :  { %v470_v42 = vsub.f32 1.0, %v469_v41 }
 0xbfb   :  { %v471_v43 = vmul.f32 %v830_v40, %v470_v42 }
 0xbfd   :  { %v472_v44 = vadd.f32 %v830_v40, %v471_v43 }
 0xbff   :  { %v476_v47 = vsel %vm475_vm10, %v830_v40, %v472_v44 }
 0xc00   :  { %v481_v50 = vsel %vm478_vm11, %v480_v48, %v476_v47 }
 0xc01   :  { %v484_v52 = vmul.f32 %v481_v50, %v434_v25 }
 0xc5e   :  { %v487_v49 = vpop.permute.xlu0 %486 }
 0xc5f   :  { %v489_v51 = vmul.f32 %v487_v49, %v481_v50 }
 0xc61   :  { %491 = vrot.lane.b32.xlu1 %v489_v51, %s880_s29  ;;  %v777_v51 = vld [vmem:[%s1040_s4 + $0x8] sm:$0xff] }
 0xc62   :  { %667 = vmatpush.bf16.msra.mxu3 %v777_v51 }
 0xcd3   :  { %v492_v53 = vpop.permute.xlu1 %491 }
 0xcd4   :  { %v494_v54 = vadd.f32 %v492_v53, %v484_v52  ;;  %v776_v52 = vld [vmem:[%s1040_s4] sm:$0xff]  ;;  %s883_s4 = smov [#allocation5]  }
 0xcd5   :  { %668 = vmatpush.bf16.msra.mxu3 %v776_v52 }
 0xcd6   :  { %831 = vtanh.f32 %v494_v54 }
 0xcdc   :  { %v832_v55 = vpop.eup %831 }
 0xcdd   :  { %497 = vrot.lane.b32.xlu2 %v832_v55, %s880_s29 }
 0xd37   :  { %v498_v57 = vpop.permute.xlu2 %497 }
 0xd38   :  { %v500_v58 = vmul.f32 %v498_v57, %v481_v50 }
 0xd3a   :  { %v503_v59 = vpack.c.bf16 %v500_v58, %v500_v58 }
 0xd3c   :  { %505 = vrot.lane.b32.xlu0 %v503_v59, %s881_s2  ;;  %v784_v59 = vld [vmem:[%s1041_s5] ss:$0 sm:$0xff]  ;;  %s700_s5 = sshll.u32 %s883_s4, 4  ;;  %s701_s5 = int_to_ptr.vmem [resolvable:$true] %s700_s5 }
 0xdae   :  { %v506_v60 = vpop.permute.xlu0 %505 }
 0xdaf   :  { %755 = vmatmul.msk.bf16.vlgmr.msra.gmra.mxu1 %vm29_vm0, %v506_v60 }
 0xe2c   :  { %v519_v63 = vpop.f32.mrf.mxu1 }
 0xe2d   :  { %v523_v0 = vadd.f32 %v519_v63, %v110_v62 }
 0xe2f   :  { %833 = vtanh.f32 %v523_v0  ;;  %v756_v3 = vmul.f32 -1.442695, %v523_v0 }
 0xe31   :  { %835 = vpow2.f32 %v756_v3 }
 0xe34   :  { %v521_v1 = vpop.f32.mrf.mxu1 }
 0xe35   :  { %v834_v2 = vpop.eup %833 }
 0xe36   :  { %546 = vrot.lane.b32.xlu1 %v834_v2, %s880_s29 }
 0xe37   :  { %v836_v4 = vpop.eup %835 }
 0xe38   :  { %v527_v5 = vadd.f32 1.0, %v836_v4 }
 0xe3a   :  { %837 = vrcp.f32 %v527_v5  ;;  %v539_v12 = vand.u32 2147483648, %v527_v5  ;;  %vm533_vm12 = vweird.f32 %v527_v5  ;;  %v537_v13 = vand.u32 2147483647, %v527_v5 }
 0xe3c   :  { %v540_v15 = vor.u32 1.1754944e-38, %v539_v12  ;;  %vm538_vm14 = vcmp.eq.f32.partialorder %v537_v13, 8.507059e+37 }
 0xe40   :  { %v838_v6 = vpop.eup %837 }
 0xe41   :  { %v529_v8 = vmul.f32 %v838_v6, %v527_v5  ;;  %vm534_vm1 = vweird.f32 %v838_v6 }
 0xe42   :  { %vm535_vm13 = vmor %vm533_vm12, %vm534_vm1 }
 0xe43   :  { %v530_v9 = vsub.f32 1.0, %v529_v8 }
 0xe45   :  { %v531_v10 = vmul.f32 %v838_v6, %v530_v9 }
 0xe47   :  { %v532_v11 = vadd.f32 %v838_v6, %v531_v10 }
 0xe49   :  { %v536_v14 = vsel %vm535_vm13, %v838_v6, %v532_v11 }
 0xe4a   :  { %v541_v17 = vsel %vm538_vm14, %v540_v15, %v536_v14 }
 0xe4b   :  { %v544_v19 = vmul.f32 %v541_v17, %v494_v54 }
 0xea8   :  { %v547_v16 = vpop.permute.xlu1 %546 }
 0xea9   :  { %v549_v18 = vmul.f32 %v547_v16, %v541_v17 }
 0xeab   :  { %551 = vrot.lane.b32.xlu2 %v549_v18, %s880_s29 }
 0xf05   :  { %v552_v20 = vpop.permute.xlu2 %551 }
 0xf06   :  { %v554_v21 = vadd.f32 %v552_v20, %v544_v19 }
 0xf08   :  { %839 = vtanh.f32 %v554_v21 }
 0xf0e   :  { %v840_v22 = vpop.eup %839 }
 0xf0f   :  { %557 = vrot.lane.b32.xlu0 %v840_v22, %s880_s29 }
 0xf81   :  { %v558_v23 = vpop.permute.xlu0 %557 }
 0xf82   :  { %v560_v24 = vmul.f32 %v558_v23, %v541_v17 }
 0xf84   :  { %v563_v25 = vpack.c.bf16 %v560_v24, %v560_v24 }
 0xf86   :  { %565 = vrot.lane.b32.xlu1 %v563_v25, %s881_s2 }
 0xff8   :  { %v566_v26 = vpop.permute.xlu1 %565 }
 0xff9   :  { %757 = vmatmul.msk.bf16.vlgmr.msra.gmra.mxu2 %vm29_vm0, %v566_v26 }
0x107c   :  { %v579_v29 = vpop.f32.mrf.mxu2 }
0x107d   :  { %v583_v30 = vadd.f32 %v579_v29, %v112_v28 }
0x107f   :  { %841 = vtanh.f32 %v583_v30  ;;  %v758_v33 = vmul.f32 -1.442695, %v583_v30 }
0x1081   :  { %843 = vpow2.f32 %v758_v33 }
0x1084   :  { %v581_v31 = vpop.f32.mrf.mxu2 }
0x1085   :  { %v842_v32 = vpop.eup %841 }
0x1086   :  { %606 = vrot.lane.b32.xlu2 %v842_v32, %s880_s29 }
0x1087   :  { %v844_v34 = vpop.eup %843 }
0x1088   :  { %v587_v35 = vadd.f32 1.0, %v844_v34 }
0x108a   :  { %845 = vrcp.f32 %v587_v35  ;;  %v599_v41 = vand.u32 2147483648, %v587_v35  ;;  %vm593_vm2 = vweird.f32 %v587_v35  ;;  %v597_v7 = vand.u32 2147483647, %v587_v35 }
0x108c   :  { %v600_v43 = vor.u32 1.1754944e-38, %v599_v41  ;;  %vm598_vm4 = vcmp.eq.f32.partialorder %v597_v7, 8.507059e+37 }
0x1090   :  { %v846_v36 = vpop.eup %845 }
0x1091   :  { %v589_v37 = vmul.f32 %v846_v36, %v587_v35  ;;  %vm594_vm15 = vweird.f32 %v846_v36 }
0x1092   :  { %vm595_vm3 = vmor %vm593_vm2, %vm594_vm15 }
0x1093   :  { %v590_v38 = vsub.f32 1.0, %v589_v37 }
0x1095   :  { %v591_v39 = vmul.f32 %v846_v36, %v590_v38 }
0x1097   :  { %v592_v40 = vadd.f32 %v846_v36, %v591_v39 }
0x1099   :  { %v596_v42 = vsel %vm595_vm3, %v846_v36, %v592_v40 }
0x109a   :  { %v601_v45 = vsel %vm598_vm4, %v600_v43, %v596_v42 }
0x109b   :  { %v604_v47 = vmul.f32 %v601_v45, %v554_v21 }
0x10e0   :  { %v607_v44 = vpop.permute.xlu2 %606 }
0x10e1   :  { %v609_v46 = vmul.f32 %v607_v44, %v601_v45 }
0x10e3   :  { %611 = vrot.lane.b32.xlu0 %v609_v46, %s880_s29 }
0x1155   :  { %v612_v48 = vpop.permute.xlu0 %611 }
0x1156   :  { %v614_v49 = vadd.f32 %v612_v48, %v604_v47 }
0x1158   :  { %847 = vtanh.f32 %v614_v49 }
0x115e   :  { %v848_v50 = vpop.eup %847 }
0x115f   :  { %617 = vrot.lane.b32.xlu1 %v848_v50, %s880_s29 }
0x1167   :  { %627 = vrot.lane.b32.xlu1 %v614_v49, %s882_s0 }
0x11d1   :  { %v618_v53 = vpop.permute.xlu1 %617 }
0x11d2   :  { %v620_v54 = vmul.f32 %v618_v53, %v601_v45 }
0x11d4   :  { %v634_v55 = vpack.c.bf16 %v620_v54, %v620_v54  ;;  %622 = vrot.lane.b32.xlu0 %v620_v54, %s881_s2 }
0x11d6   :  { %644 = vrot.lane.b32.xlu2 %v634_v55, %s881_s2 }
0x11d9   :  { %v628_v56 = vpop.permute.xlu1 %627 }
0x11da   :  { %630 = vst.msk [vmem:[#allocation3] sm:$0xff] %vm29_vm0, %v628_v56 }
0x1230   :  { %v645_v57 = vpop.permute.xlu2 %644 }
0x1231   :  { %767 = vmatmul.msk.bf16.vlgmr.msra.gmra.mxu3 %vm29_vm0, %v645_v57 }
0x1246   :  { %v623_v58 = vpop.permute.xlu0 %622 }
0x1247   :  { %625 = vst.msk [vmem:[#allocation2] sm:$0xff] %vm29_vm0, %v623_v58 }
0x12b4   :  { %v670_v60 = vpop.f32.mrf.mxu3 }
0x12b5   :  { %v671_v61 = vadd.f32 %v784_v59, %v670_v60 }
0x12b7   :  { %v768_v62 = vmul.f32 -1.442695, %v671_v61 }
0x12b9   :  { %849 = vpow2.f32 %v768_v62 }
0x12bc   :  { %v672_v63 = vpop.f32.mrf.mxu3 }
0x12bf   :  { %v850_v0 = vpop.eup %849 }
0x12c0   :  { %v677_v1 = vadd.f32 1.0, %v850_v0 }
0x12c2   :  { %851 = vrcp.f32 %v677_v1  ;;  %v689_v5 = vand.u32 2147483648, %v677_v1  ;;  %v687_v8 = vand.u32 2147483647, %v677_v1  ;;  %vm683_vm0 = vweird.f32 %v677_v1 }
0x12c4   :  { %v690_v10 = vor.u32 1.1754944e-38, %v689_v5  ;;  %vm688_vm7 = vcmp.eq.f32.partialorder %v687_v8, 8.507059e+37 }
0x12c8   :  { %v852_v2 = vpop.eup %851 }
0x12c9   :  { %v679_v3 = vmul.f32 %v852_v2, %v677_v1  ;;  %vm684_vm5 = vweird.f32 %v852_v2 }
0x12ca   :  { %vm685_vm6 = vmor %vm683_vm0, %vm684_vm5 }
0x12cb   :  { %v680_v4 = vsub.f32 1.0, %v679_v3 }
0x12cd   :  { %v681_v6 = vmul.f32 %v852_v2, %v680_v4 }
0x12cf   :  { %v682_v9 = vadd.f32 %v852_v2, %v681_v6 }
0x12d1   :  { %v686_v11 = vsel %vm685_vm6, %v852_v2, %v682_v9 }
0x12d2   :  { %v691_v12 = vsel %vm688_vm7, %v690_v10, %v686_v11 }
0x12d3   :  { %v693_v13 = vmul.f32 2.0, %v691_v12 }
0x12d5   :  { %694 = vst [vmem:[#allocation5] sm:$0xff] %v693_v13 }
0x12d6   :  { %705 = dma.vmem_to_hbm [thread:$0]  %s701_s5, 128, %s703_s20, [#allocation6]  }
0x12d7   :  { %877 = dma.done.wait [#allocation6], 128  }
0x12d8   :  { %878 = vsyncadd [#allocation6], 4294967168 }
0x12d9   :  { %710 = vsyncpa [#allocation6], 1 }

</bundles_post_ra>
